<compile_context>
chip_gen: v5e
topology: v5e:2x2
jax: 0.10.0
libtpu: 0.0.40
codegen_flags: <defaults>
</compile_context>

<pallas_src>
import jax
import jax.numpy as jnp
from jax.experimental import pallas as pl
from jax.experimental.pallas import tpu as pltpu


LANE = 128            # TPU lane width (packed-vector slab width)
PREFERRED_TILE_B = 1024
HIDDEN = 64           # flattened hidden width (hidden_size * |group|)

# rows inside the packed (8, 128) vector slab
_ROW_B1, _ROW_B2, _ROW_B3, _ROW_SCALE, _ROW_BIAS = 0, 1, 2, 3, 4


def _actor_kernel(x_ref, w1_ref, w2_ref, w3_ref, vec_ref, o_ref):
    # x tile: (tile_b, obs_dim) f32; weights (in, out) f32 resident in VMEM;
    # vec: (8, 128) f32 slab holding b1 / b2 / b3 / action_scale / action_bias.
    hidden = w1_ref.shape[1]
    act_dim = w3_ref.shape[1]

    b1 = vec_ref[_ROW_B1:_ROW_B1 + 1, :hidden]
    b2 = vec_ref[_ROW_B2:_ROW_B2 + 1, :hidden]
    b3 = vec_ref[_ROW_B3:_ROW_B3 + 1, :act_dim]
    scale = vec_ref[_ROW_SCALE:_ROW_SCALE + 1, :act_dim]
    bias = vec_ref[_ROW_BIAS:_ROW_BIAS + 1, :act_dim]

    x = x_ref[...]

    # fc1 + tanh
    h1 = jnp.tanh(jnp.dot(x, w1_ref[...], preferred_element_type=jnp.float32) + b1)
    # fc2 + tanh
    h2 = jnp.tanh(jnp.dot(h1, w2_ref[...], preferred_element_type=jnp.float32) + b2)
    # fc_mu + tanh (narrow act_dim output; no lane padding)
    mu = jnp.tanh(jnp.dot(h2, w3_ref[...], preferred_element_type=jnp.float32) + b3)

    # rescale to action range; compact (tile_b, act_dim) store
    o_ref[...] = mu * scale + bias


def _pack_vectors(b1, b2, b3, scale, bias):
    """Pack the five (1, dim) f32 row vectors into one (8, 128) f32 slab."""
    hidden = b1.shape[1]
    act_dim = b3.shape[1]
    assert hidden <= LANE and act_dim <= LANE, "packed-vector slab assumes dims <= 128"
    vec = jnp.zeros((8, LANE), jnp.float32)
    vec = vec.at[_ROW_B1, :hidden].set(b1[0].astype(jnp.float32))
    vec = vec.at[_ROW_B2, :hidden].set(b2[0].astype(jnp.float32))
    vec = vec.at[_ROW_B3, :act_dim].set(b3[0].astype(jnp.float32))
    vec = vec.at[_ROW_SCALE, :act_dim].set(scale[0].astype(jnp.float32))
    vec = vec.at[_ROW_BIAS, :act_dim].set(bias[0].astype(jnp.float32))
    return vec


def prepare_kernel_params(params):
    """Convert logical f32 params into the kernel layout (done once)."""
    w1, b1, w2, b2, w3, b3, scale, bias = params
    vec = _pack_vectors(b1, b2, b3, scale, bias)
    return (w1.astype(jnp.float32), w2.astype(jnp.float32),
            w3.astype(jnp.float32), vec)


def _choose_tile_b(B, preferred=PREFERRED_TILE_B):
    """Big tiles to amortize ~0.35us/step, but keep >=2 grid steps (v7x megacore)."""
    if B <= 256:
        return B
    half = (B + 1) // 2
    tile = ((half + 127) // 128) * 128
    return min(preferred, tile)


def actor_forward(x, kparams, *, tile_b=None):
    """x: (B, obs_dim) float32 -> (B, act_dim) float32."""
    w1, w2, w3, vec = kparams
    B, obs_dim = x.shape
    hidden = w1.shape[1]
    act_dim = w3.shape[1]

    if tile_b is None:
        tile_b = _choose_tile_b(B)
    grid = (pl.cdiv(B, tile_b),)

    # Weights / packed vectors: same block every step -> stay resident in VMEM.
    def resident(shape):
        return pl.BlockSpec(shape, lambda i: (0, 0))

    flops = 2 * B * (obs_dim * hidden + hidden * hidden + hidden * act_dim)
    transcendentals = B * (2 * hidden + act_dim)
    bytes_accessed = (B * obs_dim * 4 + B * act_dim * 4
                      + 4 * (w1.size + w2.size + w3.size + vec.size))

    out = pl.pallas_call(
        _actor_kernel,
        out_shape=jax.ShapeDtypeStruct((B, act_dim), jnp.float32),
        grid=grid,
        in_specs=[
            pl.BlockSpec((tile_b, obs_dim), lambda i: (i, 0)),   # streamed x
            resident(w1.shape),
            resident(w2.shape),
            resident(w3.shape),
            resident(vec.shape),
        ],
        out_specs=pl.BlockSpec((tile_b, act_dim), lambda i: (i, 0)),
        compiler_params=pltpu.CompilerParams(
            dimension_semantics=("parallel",),  # both TCs on v7x; harmless elsewhere
        ),
        cost_estimate=pl.CostEstimate(
            flops=flops,
            transcendentals=transcendentals,
            bytes_accessed=bytes_accessed,
        ),
    )(x, w1, w2, w3, vec)

    return out


def make_params(key, obs_dim, act_dim, action_low, action_high, hidden=HIDDEN):
    """Deterministic synthetic parameters matching the PyTorch module shapes.

    PyTorch nn.Linear-style weights are (out, in); we store (in, out) so the
    kernel computes y = x @ W + b directly on the MXU.
    """
    ks = jax.random.split(key, 6)
    w1 = jax.random.normal(ks[0], (obs_dim, hidden), jnp.float32) * 0.1
    b1 = jax.random.normal(ks[1], (1, hidden), jnp.float32) * 0.1
    w2 = jax.random.normal(ks[2], (hidden, hidden), jnp.float32) * 0.1
    b2 = jax.random.normal(ks[3], (1, hidden), jnp.float32) * 0.1
    w3 = jax.random.normal(ks[4], (hidden, act_dim), jnp.float32) * 0.1
    b3 = jax.random.normal(ks[5], (1, act_dim), jnp.float32) * 0.1
    scale = ((action_high - action_low) / 2.0).reshape(1, act_dim).astype(jnp.float32)
    bias = ((action_high + action_low) / 2.0).reshape(1, act_dim).astype(jnp.float32)
    return (w1, b1, w2, b2, w3, b3, scale, bias)


def actor_reference(x, params):
    """Pure-JAX f32 reference matching the module forward (tanh activations)."""
    w1, b1, w2, b2, w3, b3, scale, bias = params
    h1 = jnp.tanh(x @ w1 + b1)
    h2 = jnp.tanh(h1 @ w2 + b2)
    mu = jnp.tanh(h2 @ w3 + b3)
    return mu * scale + bias


if __name__ == "__main__":
    key = jax.random.PRNGKey(0)
    k_x, k_p = jax.random.split(key)

    batch = 512     # -> tile_b = 256, 2 grid steps (both TCs on v7x)
    obs_dim = 16    # flattened observation (1 channel x group dim)
    act_dim = 4     # flattened action (1 channel x group dim)

    # synthetic action bounds (env.action_space.low/high)
    action_low = -2.0 * jnp.ones((act_dim,), jnp.float32)
    action_high = 2.0 * jnp.ones((act_dim,), jnp.float32)

    x = jax.random.normal(k_x, (batch, obs_dim), jnp.float32)
    params = make_params(k_p, obs_dim, act_dim, action_low, action_high)
    kparams = prepare_kernel_params(params)

    out = actor_forward(x, kparams)
    out = jax.block_until_ready(out)

    ref = actor_reference(x, params)
    assert out.shape == (batch, act_dim)
    assert jnp.allclose(out, ref, atol=2e-2, rtol=0.0), float(jnp.max(jnp.abs(out - ref)))

    print("KERNEL_OK")
</pallas_src>

<mosaic_0001>
module attributes {stable_mosaic.version = 11 : i64} {
  func.func @_actor_kernel(%arg0: i32, %arg1: memref<256x16xf32, #tpu.memory_space<vmem>>, %arg2: memref<16x64xf32, #tpu.memory_space<vmem>>, %arg3: memref<64x64xf32, #tpu.memory_space<vmem>>, %arg4: memref<64x4xf32, #tpu.memory_space<vmem>>, %arg5: memref<8x128xf32, #tpu.memory_space<vmem>>, %arg6: memref<256x4xf32, #tpu.memory_space<vmem>>) attributes {dimension_semantics = [#tpu.dimension_semantics<parallel>], iteration_bounds = array<i64: 2>, scalar_prefetch = 0 : i64, scratch_operands = 0 : i64, tpu.core_type = #tpu.core_type<tc>, window_params = [{transform_indices = @transform_0, window_bounds = array<i64: 256, 16>}, {pipeline_mode = #tpu.pipeline_mode<synchronous>, transform_indices = @transform_1, window_bounds = array<i64: 16, 64>}, {pipeline_mode = #tpu.pipeline_mode<synchronous>, transform_indices = @transform_2, window_bounds = array<i64: 64, 64>}, {pipeline_mode = #tpu.pipeline_mode<synchronous>, transform_indices = @transform_3, window_bounds = array<i64: 64, 4>}, {pipeline_mode = #tpu.pipeline_mode<synchronous>, transform_indices = @transform_4, window_bounds = array<i64: 8, 128>}, {transform_indices = @transform_5, window_bounds = array<i64: 256, 4>}]} {
    %c0 = arith.constant 0 : index
    %c0_0 = arith.constant 0 : index
    %0 = vector.load %arg5[%c0, %c0_0] : memref<8x128xf32, #tpu.memory_space<vmem>>, vector<1x64xf32>
    %c1 = arith.constant 1 : index
    %c0_1 = arith.constant 0 : index
    %1 = vector.load %arg5[%c1, %c0_1] : memref<8x128xf32, #tpu.memory_space<vmem>>, vector<1x64xf32>
    %c2 = arith.constant 2 : index
    %c0_2 = arith.constant 0 : index
    %2 = vector.load %arg5[%c2, %c0_2] : memref<8x128xf32, #tpu.memory_space<vmem>>, vector<1x4xf32>
    %c3 = arith.constant 3 : index
    %c0_3 = arith.constant 0 : index
    %3 = vector.load %arg5[%c3, %c0_3] : memref<8x128xf32, #tpu.memory_space<vmem>>, vector<1x4xf32>
    %c4 = arith.constant 4 : index
    %c0_4 = arith.constant 0 : index
    %4 = vector.load %arg5[%c4, %c0_4] : memref<8x128xf32, #tpu.memory_space<vmem>>, vector<1x4xf32>
    %c0_5 = arith.constant 0 : index
    %c0_6 = arith.constant 0 : index
    %5 = vector.load %arg1[%c0_5, %c0_6] : memref<256x16xf32, #tpu.memory_space<vmem>>, vector<256x16xf32>
    %c0_7 = arith.constant 0 : index
    %c0_8 = arith.constant 0 : index
    %6 = vector.load %arg2[%c0_7, %c0_8] : memref<16x64xf32, #tpu.memory_space<vmem>>, vector<16x64xf32>
    %cst = arith.constant dense<0.000000e+00> : vector<256x64xf32>
    %7 = tpu.matmul %5, %6, %cst {dimension_numbers = #tpu.dot_dimension_numbers<[1], [0], [0], [1], [0, 0, 1, 1], [], []>} : vector<256x16xf32>, vector<16x64xf32>, vector<256x64xf32> -> vector<256x64xf32>
    %8 = vector.broadcast %0 : vector<1x64xf32> to vector<256x64xf32>
    %9 = arith.addf %7, %8 : vector<256x64xf32>
    %10 = math.tanh %9 : vector<256x64xf32>
    %c0_9 = arith.constant 0 : index
    %c0_10 = arith.constant 0 : index
    %11 = vector.load %arg3[%c0_9, %c0_10] : memref<64x64xf32, #tpu.memory_space<vmem>>, vector<64x64xf32>
    %cst_11 = arith.constant dense<0.000000e+00> : vector<256x64xf32>
    %12 = tpu.matmul %10, %11, %cst_11 {dimension_numbers = #tpu.dot_dimension_numbers<[1], [0], [0], [1], [0, 0, 1, 1], [], []>} : vector<256x64xf32>, vector<64x64xf32>, vector<256x64xf32> -> vector<256x64xf32>
    %13 = vector.broadcast %1 : vector<1x64xf32> to vector<256x64xf32>
    %14 = arith.addf %12, %13 : vector<256x64xf32>
    %15 = math.tanh %14 : vector<256x64xf32>
    %c0_12 = arith.constant 0 : index
    %c0_13 = arith.constant 0 : index
    %16 = vector.load %arg4[%c0_12, %c0_13] : memref<64x4xf32, #tpu.memory_space<vmem>>, vector<64x4xf32>
    %cst_14 = arith.constant dense<0.000000e+00> : vector<256x4xf32>
    %17 = tpu.matmul %15, %16, %cst_14 {dimension_numbers = #tpu.dot_dimension_numbers<[1], [0], [0], [1], [0, 0, 1, 1], [], []>} : vector<256x64xf32>, vector<64x4xf32>, vector<256x4xf32> -> vector<256x4xf32>
    %18 = vector.broadcast %2 : vector<1x4xf32> to vector<256x4xf32>
    %19 = arith.addf %17, %18 : vector<256x4xf32>
    %20 = math.tanh %19 : vector<256x4xf32>
    %21 = vector.broadcast %3 : vector<1x4xf32> to vector<256x4xf32>
    %22 = arith.mulf %20, %21 : vector<256x4xf32>
    %23 = vector.broadcast %4 : vector<1x4xf32> to vector<256x4xf32>
    %24 = arith.addf %22, %23 : vector<256x4xf32>
    %c0_15 = arith.constant 0 : index
    %c0_16 = arith.constant 0 : index
    %25 = vector.load %arg6[%c0_15, %c0_16] : memref<256x4xf32, #tpu.memory_space<vmem>>, vector<256x4xf32>
    tpu.vector_store %arg6[%c0_15, %c0_16], %24 {strides = array<i32>} : memref<256x4xf32, #tpu.memory_space<vmem>>, vector<256x4xf32>,
    return
  }
  func.func @transform_0(%arg0: i32) -> (i32, i32) {
    %c0_i32 = arith.constant 0 : i32
    %c0_i32_0 = arith.constant 0 : i32
    return %arg0, %c0_i32 : i32, i32
  }
  func.func @transform_1(%arg0: i32) -> (i32, i32) {
    %c0_i32 = arith.constant 0 : i32
    %c0_i32_0 = arith.constant 0 : i32
    %c0_i32_1 = arith.constant 0 : i32
    return %c0_i32, %c0_i32_0 : i32, i32
  }
  func.func @transform_2(%arg0: i32) -> (i32, i32) {
    %c0_i32 = arith.constant 0 : i32
    %c0_i32_0 = arith.constant 0 : i32
    %c0_i32_1 = arith.constant 0 : i32
    return %c0_i32, %c0_i32_0 : i32, i32
  }
  func.func @transform_3(%arg0: i32) -> (i32, i32) {
    %c0_i32 = arith.constant 0 : i32
    %c0_i32_0 = arith.constant 0 : i32
    %c0_i32_1 = arith.constant 0 : i32
    return %c0_i32, %c0_i32_0 : i32, i32
  }
  func.func @transform_4(%arg0: i32) -> (i32, i32) {
    %c0_i32 = arith.constant 0 : i32
    %c0_i32_0 = arith.constant 0 : i32
    %c0_i32_1 = arith.constant 0 : i32
    return %c0_i32, %c0_i32_0 : i32, i32
  }
  func.func @transform_5(%arg0: i32) -> (i32, i32) {
    %c0_i32 = arith.constant 0 : i32
    %c0_i32_0 = arith.constant 0 : i32
    return %arg0, %c0_i32 : i32, i32
  }
}

</mosaic_0001>

<bundles_post_ra>
// kernel: tpu_custom_call.1
= control target key start
LH: loop header
LB: loop body
LE: loop exit
PB: predicated region body
PF: predicated region fallthrough
CT: control target
= control target key end

     0   :  { %s1534_s18 = smov 0   ;;  %s1993_s0 = inlined_call_operand.vmem [shape: f32[512,16], index: 0, kind: input, shape index: {}]   ;;  %s1994_s1 = inlined_call_operand.vmem [shape: f32[16,64], index: 1, kind: input, shape index: {}]   ;;  %s1995_s2 = inlined_call_operand.vmem [shape: f32[64,64], index: 2, kind: input, shape index: {}]   ;;  %s1996_s3 = inlined_call_operand.vmem [shape: f32[64,4], index: 3, kind: input, shape index: {}]   ;;  %s1997_s4 = inlined_call_operand.vmem [shape: f32[8,128], index: 4, kind: input, shape index: {}]   ;;  %s1998_s5 = inlined_call_operand.vmem [shape: f32[512,4], index: 5, kind: output, shape index: {}]  }
   0x1 LB: > { %s1166_s19 = sadd.s32 4294967295, %s1502_s18   ;;  %p1170_p0 = scmp.ge.s32.totalorder %s1502_s18, 1  ;;  %s1502_s18 = sphi %s1534_s18, %s15_s18  }
   0x2   : > { %p188_p1 = scmp.lt.s32.totalorder %s1502_s18, 3 }
   0x4   : > { %p189_p2 = pnand %p1170_p0, %p188_p1 }
   0x5   : > { %s1171_s24 = sshll.u32 (!%p189_p2), %s1166_s19, 5 }
   0x6   : > { %192 = sbr.rel (%p189_p2) target bundleno = 685 (0x2ad), region = 40  ;;  %p217_p3 = scmp.lt.s32.totalorder (!%p189_p2), %s1171_s24, 63 }
   0xb   : > { %v266_v0 = vld [vmem:[%s1994_s1 + $0x8] sm:$0xff]  ;;  %v265_v1 = vld [vmem:[%s1994_s1] sm:$0xff]  ;;  %s2000_s24 = smov (!%p217_p3, %s1171_s24), 63  ;;  %vm268_vm0 = vcmask 130048   ;;  %v517_v14 = vld [vmem:[%s1995_s2 + $0x38] sm:$0xff]  ;;  %vm519_vm1 = vcmask 523264  }
   0xc   : > { %379 = vmatpush.msra.mxu0 %v266_v0  ;;  %1273 = vmatpush.msra.mxu3 %v266_v0  ;;  %s1172_s25 = sshll.u32 %s2000_s24, 3  ;;  %v516_v15 = vld [vmem:[%s1995_s2 + $0x30] sm:$0xff]  ;;  %v515_v16 = vld [vmem:[%s1995_s2 + $0x28] sm:$0xff]  ;;  %v514_v18 = vld [vmem:[%s1995_s2 + $0x20] sm:$0xff]  ;;  %vm1077_vm2 = vcmask 31744  }
   0xd   : > { %s1556_s28 = scalar_lea.vmem %s1993_s0, %s1172_s25  ;;  %624 = vmatpush.msra.mxu1 %v517_v14  ;;  %v513_v19 = vld [vmem:[%s1995_s2 + $0x18] sm:$0xff]  ;;  %v512_v20 = vld [vmem:[%s1995_s2 + $0x10] sm:$0xff]  ;;  %v511_v21 = vld [vmem:[%s1995_s2 + $0x8] sm:$0xff]  ;;  %s1804_s29 = scalar_lea.vmem %s1998_s5, %s1172_s25 }
   0xe   : > { %380 = vmatpush.msra.mxu0 %v265_v1  ;;  %1274 = vmatpush.msra.mxu3 %v265_v1  ;;  %v233_v2 = vld [vmem:[%s1556_s28] sm:$0xff]  ;;  %v234_v3 = vld [vmem:[%s1556_s28 + $0x8] sm:$0xff]  ;;  %v235_v4 = vld [vmem:[%s1556_s28 + $0x10] sm:$0xff] }
   0xf   : > { %1175 = vmatmul.msk.f32.vlgmr.msra.gmra.mxu0 %vm268_vm0, %v233_v2  ;;  %v236_v5 = vld [vmem:[%s1556_s28 + $0x18] sm:$0xff]  ;;  %v237_v6 = vld [vmem:[%s1556_s28 + $0x20] sm:$0xff]  ;;  %v238_v7 = vld [vmem:[%s1556_s28 + $0x28] sm:$0xff]  ;;  %625 = vmatpush.msra.mxu1 %v516_v15 }
  0x10   : > { %v239_v8 = vld [vmem:[%s1556_s28 + $0x30] sm:$0xff]  ;;  %v240_v9 = vld [vmem:[%s1556_s28 + $0x38] sm:$0xff]  ;;  %v241_v10 = vld [vmem:[%s1556_s28 + $0x40] sm:$0xff]  ;;  %1275 = vmatpush.msrb.mxu3 %v517_v14 }
  0x11   : > { %v242_v11 = vld [vmem:[%s1556_s28 + $0x48] sm:$0xff]  ;;  %v243_v12 = vld [vmem:[%s1556_s28 + $0x50] sm:$0xff]  ;;  %v244_v13 = vld [vmem:[%s1556_s28 + $0x58] sm:$0xff]  ;;  %626 = vmatpush.msra.mxu1 %v515_v16 }
  0x12   : > { %1276 = vmatpush.msrb.mxu3 %v516_v15  ;;  %v245_v17 = vld [vmem:[%s1556_s28 + $0x60] sm:$0xff]  ;;  %v246_v22 = vld [vmem:[%s1556_s28 + $0x68] sm:$0xff]  ;;  %v247_v24 = vld [vmem:[%s1556_s28 + $0x70] sm:$0xff] }
  0x13   : > { %627 = vmatpush.msra.mxu1 %v514_v18  ;;  %v510_v23 = vld [vmem:[%s1995_s2] sm:$0xff]  ;;  %v248_v25 = vld [vmem:[%s1556_s28 + $0x78] sm:$0xff]  ;;  %v250_v31 = vld [vmem:[%s1556_s28 + $0x88] sm:$0xff] }
  0x14   : > { %1277 = vmatpush.msrb.mxu3 %v515_v16  ;;  %v1617_v26 = vld [vmem:[%s1997_s4] ss:$0 sm:$0xff]  ;;  %v251_v35 = vld [vmem:[%s1556_s28 + $0x90] sm:$0xff]  ;;  %v252_v39 = vld [vmem:[%s1556_s28 + $0x98] sm:$0xff] }
  0x15   : > { %628 = vmatpush.msra.mxu1 %v513_v19  ;;  %v249_v28 = vld [vmem:[%s1556_s28 + $0x80] sm:$0xff]  ;;  %v258_v46 = vld [vmem:[%s1556_s28 + $0xc8] sm:$0xff]  ;;  %v259_v51 = vld [vmem:[%s1556_s28 + $0xd0] sm:$0xff] }
  0x16   : > { %1278 = vmatpush.msrb.mxu3 %v514_v18  ;;  %v253_v43 = vld [vmem:[%s1556_s28 + $0xa0] sm:$0xff]  ;;  %v254_v48 = vld [vmem:[%s1556_s28 + $0xa8] sm:$0xff]  ;;  %v255_v53 = vld [vmem:[%s1556_s28 + $0xb0] sm:$0xff] }
  0x17   : > { %1176 = vmatmul.msk.f32.gmra.mxu0 %vm268_vm0, %v234_v3  ;;  %629 = vmatpush.msra.mxu1 %v512_v20  ;;  %v260_v56 = vld [vmem:[%s1556_s28 + $0xd8] sm:$0xff]  ;;  %v261_v61 = vld [vmem:[%s1556_s28 + $0xe0] sm:$0xff]  ;;  %v262_v2 = vld [vmem:[%s1556_s28 + $0xe8] sm:$0xff] }
  0x18   : > { %1279 = vmatpush.msrb.mxu3 %v513_v19  ;;  %v256_v58 = vld [vmem:[%s1556_s28 + $0xb8] sm:$0xff]  ;;  %v257_v63 = vld [vmem:[%s1556_s28 + $0xc0] sm:$0xff]  ;;  %v767_v18 = vld [vmem:[%s1996_s3 + $0x30] sm:$0xff] }
  0x19   : > { %630 = vmatpush.msra.mxu1 %v511_v21  ;;  %1200 = vmatmul.msk.f32.vlgmr.msra.gmra.mxu3 %vm268_vm0, %v258_v46  ;;  %v766_v19 = vld [vmem:[%s1996_s3 + $0x28] sm:$0xff] }
  0x1a   : > { %1280 = vmatpush.msrb.mxu3 %v512_v20  ;;  %v765_v20 = vld [vmem:[%s1996_s3 + $0x20] sm:$0xff] }
  0x1b   : > { %631 = vmatpush.msra.mxu1 %v510_v23 }
  0x1c   : > { %1281 = vmatpush.msrb.mxu3 %v511_v21 }
  0x1e   : > { %1282 = vmatpush.msrb.mxu3 %v510_v23 }
  0x1f   : > { %1177 = vmatmul.msk.f32.gmra.mxu0 %vm268_vm0, %v235_v4 }
  0x21   : > { %1201 = vmatmul.msk.f32.gmra.mxu3 %vm268_vm0, %v259_v51 }
  0x27   : > { %1178 = vmatmul.msk.f32.gmra.mxu0 %vm268_vm0, %v236_v5 }
  0x29   : > { %1202 = vmatmul.msk.f32.gmra.mxu3 %vm268_vm0, %v260_v56 }
  0x2f   : > { %1179 = vmatmul.msk.f32.gmra.mxu0 %vm268_vm0, %v237_v6  ;;  %v263_v6 = vld [vmem:[%s1556_s28 + $0xf0] sm:$0xff] }
  0x31   : > { %1203 = vmatmul.msk.f32.gmra.mxu3 %vm268_vm0, %v261_v61 }
  0x37   : > { %1180 = vmatmul.msk.f32.gmra.mxu0 %vm268_vm0, %v238_v7 }
  0x39   : > { %1204 = vmatmul.msk.f32.gmra.mxu3 %vm268_vm0, %v262_v2 }
  0x3f   : > { %1181 = vmatmul.msk.f32.gmra.mxu0 %vm268_vm0, %v239_v8 }
  0x41   : > { %1205 = vmatmul.msk.f32.gmra.mxu3 %vm268_vm0, %v263_v6 }
  0x47   : > { %1182 = vmatmul.msk.f32.gmra.mxu0 %vm268_vm0, %v240_v9 }
  0x4f   : > { %1183 = vmatmul.msk.f32.gmra.mxu0 %vm268_vm0, %v241_v10  ;;  %v264_v10 = vld [vmem:[%s1556_s28 + $0xf8] sm:$0xff] }
  0x50   : > { %1206 = vmatmul.msk.f32.gmra.mxu3 %vm268_vm0, %v264_v10 }
  0x57   : > { %1184 = vmatmul.msk.f32.gmra.mxu0 %vm268_vm0, %v242_v11 }
  0x5f   : > { %1185 = vmatmul.msk.f32.gmra.mxu0 %vm268_vm0, %v243_v12 }
  0x67   : > { %1186 = vmatmul.msk.f32.gmra.mxu0 %vm268_vm0, %v244_v13 }
  0x6f   : > { %1187 = vmatmul.msk.f32.gmra.mxu0 %vm268_vm0, %v245_v17  ;;  %v768_v17 = vld [vmem:[%s1996_s3 + $0x38] sm:$0xff] }
  0x70   : > { %874 = vmatpush.msra.mxu2 %v768_v17  ;;  %1283 = vmatpush.msra.mxu3 %v768_v17 }
  0x72   : > { %875 = vmatpush.msra.mxu2 %v767_v18  ;;  %1284 = vmatpush.msra.mxu3 %v767_v18 }
  0x74   : > { %876 = vmatpush.msra.mxu2 %v766_v19  ;;  %1285 = vmatpush.msra.mxu3 %v766_v19 }
  0x76   : > { %877 = vmatpush.msra.mxu2 %v765_v20  ;;  %1286 = vmatpush.msra.mxu3 %v765_v20 }
  0x77   : > { %1188 = vmatmul.msk.f32.gmra.mxu0 %vm268_vm0, %v246_v22 }
  0x7f   : > { %1189 = vmatmul.msk.f32.gmra.mxu0 %vm268_vm0, %v247_v24  ;;  %v764_v24 = vld [vmem:[%s1996_s3 + $0x18] sm:$0xff] }
  0x80   : > { %878 = vmatpush.msra.mxu2 %v764_v24  ;;  %1287 = vmatpush.msra.mxu3 %v764_v24 }
  0x87   : > { %1190 = vmatmul.msk.f32.gmra.mxu0 %vm268_vm0, %v248_v25  ;;  %v763_v25 = vld [vmem:[%s1996_s3 + $0x10] sm:$0xff] }
  0x88   : > { %879 = vmatpush.msra.mxu2 %v763_v25  ;;  %1288 = vmatpush.msra.mxu3 %v763_v25 }
  0x8c   : > { %v382_v27 = vpop.f32.mrf.mxu0 }
  0x8d   : > { %v383_v29 = vadd.f32 %v1617_v26, %v382_v27  ;;  %v762_v27 = vld [vmem:[%s1996_s3 + $0x8] sm:$0xff] }
  0x8e   : > { %880 = vmatpush.msra.mxu2 %v762_v27  ;;  %1289 = vmatpush.msra.mxu3 %v762_v27 }
  0x8f   : > { %1304 = vtanh.f32 %v383_v29  ;;  %1191 = vmatmul.msk.f32.gmra.mxu0 %vm268_vm0, %v249_v28  ;;  %v761_v28 = vld [vmem:[%s1996_s3] sm:$0xff] }
  0x90   : > { %881 = vmatpush.msra.mxu2 %v761_v28  ;;  %1290 = vmatpush.msra.mxu3 %v761_v28 }
  0x94   : > { %v385_v30 = vpop.f32.mrf.mxu0 }
  0x95   : > { %v1305_v32 = vpop.eup %1304  ;;  %v386_v33 = vadd.f32 %v1617_v26, %v385_v30 }
  0x96   : > { %1207 = vmatmul.msk.f32.vlgmr.msra.gmra.mxu1 %vm519_vm1, %v1305_v32 }
  0x97   : > { %1306 = vtanh.f32 %v386_v33  ;;  %1192 = vmatmul.msk.f32.gmra.mxu0 %vm268_vm0, %v250_v31 }
  0x9c   : > { %v388_v34 = vpop.f32.mrf.mxu0  ;;  %v457_v10 = vpop.f32.mrf.mxu3 }
  0x9d   : > { %v1307_v36 = vpop.eup %1306  ;;  %v389_v37 = vadd.f32 %v1617_v26, %v388_v34  ;;  %v458_v24 = vadd.f32 %v1617_v26, %v457_v10 }
  0x9e   : > { %1208 = vmatmul.msk.f32.gmra.mxu1 %vm519_vm1, %v1307_v36 }
  0x9f   : > { %1308 = vtanh.f32 %v389_v37  ;;  %1193 = vmatmul.msk.f32.gmra.mxu0 %vm268_vm0, %v251_v35 }
  0xa4   : > { %v391_v38 = vpop.f32.mrf.mxu0 }
  0xa5   : > { %v1309_v40 = vpop.eup %1308  ;;  %v392_v41 = vadd.f32 %v1617_v26, %v391_v38  ;;  %v1711_v38 = vld [vmem:[%s1997_s4 + $0x1] ss:$0 sm:$0xff] }
  0xa6   : > { %1209 = vmatmul.msk.f32.gmra.mxu1 %vm519_vm1, %v1309_v40 }
  0xa7   : > { %1310 = vtanh.f32 %v392_v41  ;;  %1194 = vmatmul.msk.f32.gmra.mxu0 %vm268_vm0, %v252_v39 }
  0xac   : > { %v394_v42 = vpop.f32.mrf.mxu0 }
  0xad   : > { %v1311_v44 = vpop.eup %1310  ;;  %v395_v45 = vadd.f32 %v1617_v26, %v394_v42 }
  0xae   : > { %1210 = vmatmul.msk.f32.gmra.mxu1 %vm519_vm1, %v1311_v44 }
  0xaf   : > { %1312 = vtanh.f32 %v395_v45  ;;  %1195 = vmatmul.msk.f32.gmra.mxu0 %vm268_vm0, %v253_v43 }
  0xb4   : > { %v397_v47 = vpop.f32.mrf.mxu0 }
  0xb5   : > { %v1313_v49 = vpop.eup %1312  ;;  %v398_v50 = vadd.f32 %v1617_v26, %v397_v47 }
  0xb6   : > { %1211 = vmatmul.msk.f32.gmra.mxu1 %vm519_vm1, %v1313_v49 }
  0xb7   : > { %1314 = vtanh.f32 %v398_v50  ;;  %1196 = vmatmul.msk.f32.gmra.mxu0 %vm268_vm0, %v254_v48 }
  0xbc   : > { %v400_v52 = vpop.f32.mrf.mxu0 }
  0xbd   : > { %v1315_v54 = vpop.eup %1314  ;;  %v401_v55 = vadd.f32 %v1617_v26, %v400_v52 }
  0xbe   : > { %1212 = vmatmul.msk.f32.gmra.mxu1 %vm519_vm1, %v1315_v54 }
  0xbf   : > { %1316 = vtanh.f32 %v401_v55  ;;  %1197 = vmatmul.msk.f32.gmra.mxu0 %vm268_vm0, %v255_v53 }
  0xc4   : > { %v403_v57 = vpop.f32.mrf.mxu0 }
  0xc5   : > { %v1317_v59 = vpop.eup %1316  ;;  %v404_v60 = vadd.f32 %v1617_v26, %v403_v57 }
  0xc6   : > { %1213 = vmatmul.msk.f32.gmra.mxu1 %vm519_vm1, %v1317_v59 }
  0xc7   : > { %1318 = vtanh.f32 %v404_v60  ;;  %1198 = vmatmul.msk.f32.gmra.mxu0 %vm268_vm0, %v256_v58 }
  0xcc   : > { %v406_v62 = vpop.f32.mrf.mxu0 }
  0xcd   : > { %v1319_v0 = vpop.eup %1318  ;;  %v407_v1 = vadd.f32 %v1617_v26, %v406_v62 }
  0xce   : > { %1214 = vmatmul.msk.f32.gmra.mxu1 %vm519_vm1, %v1319_v0 }
  0xcf   : > { %1320 = vtanh.f32 %v407_v1  ;;  %1199 = vmatmul.msk.f32.gmra.mxu0 %vm268_vm0, %v257_v63 }
  0xd4   : > { %v409_v3 = vpop.f32.mrf.mxu0 }
  0xd5   : > { %v1321_v4 = vpop.eup %1320  ;;  %v410_v5 = vadd.f32 %v1617_v26, %v409_v3 }
  0xd6   : > { %1215 = vmatmul.msk.f32.gmra.mxu1 %vm519_vm1, %v1321_v4 }
  0xd7   : > { %1322 = vtanh.f32 %v410_v5 }
  0xdc   : > { %v412_v7 = vpop.f32.mrf.mxu0 }
  0xdd   : > { %v1323_v8 = vpop.eup %1322  ;;  %v413_v9 = vadd.f32 %v1617_v26, %v412_v7 }
  0xde   : > { %1216 = vmatmul.msk.f32.gmra.mxu1 %vm519_vm1, %v1323_v8 }
  0xdf   : > { %1324 = vtanh.f32 %v413_v9 }
  0xe4   : > { %v415_v11 = vpop.f32.mrf.mxu0 }
  0xe5   : > { %v1325_v12 = vpop.eup %1324  ;;  %v416_v13 = vadd.f32 %v1617_v26, %v415_v11 }
  0xe6   : > { %1217 = vmatmul.msk.f32.gmra.mxu1 %vm519_vm1, %v1325_v12 }
  0xe7   : > { %1326 = vtanh.f32 %v416_v13 }
  0xec   : > { %v418_v14 = vpop.f32.mrf.mxu0 }
  0xed   : > { %v1327_v15 = vpop.eup %1326  ;;  %v419_v16 = vadd.f32 %v1617_v26, %v418_v14 }
  0xee   : > { %1218 = vmatmul.msk.f32.gmra.mxu1 %vm519_vm1, %v1327_v15 }
  0xef   : > { %1328 = vtanh.f32 %v419_v16 }
  0xf4   : > { %v421_v21 = vpop.f32.mrf.mxu0 }
  0xf5   : > { %v1329_v22 = vpop.eup %1328  ;;  %v422_v23 = vadd.f32 %v1617_v26, %v421_v21  ;;  %v460_v21 = vpop.f32.mrf.mxu3 }
  0xf6   : > { %1219 = vmatmul.msk.f32.gmra.mxu1 %vm519_vm1, %v1329_v22 }
  0xf7   : > { %1330 = vtanh.f32 %v422_v23 }
  0xfc   : > { %v424_v29 = vpop.f32.mrf.mxu0 }
  0xfd   : > { %v1331_v30 = vpop.eup %1330  ;;  %v425_v31 = vadd.f32 %v1617_v26, %v424_v29 }
  0xfe   : > { %1220 = vmatmul.msk.f32.gmra.mxu1 %vm519_vm1, %v1331_v30  ;;  %v463_v30 = vpop.f32.mrf.mxu3 }
  0xff   : > { %1332 = vtanh.f32 %v425_v31  ;;  %v461_v31 = vadd.f32 %v1617_v26, %v460_v21 }
 0x104   : > { %v427_v32 = vpop.f32.mrf.mxu0 }
 0x105   : > { %v1333_v33 = vpop.eup %1332  ;;  %v428_v34 = vadd.f32 %v1617_v26, %v427_v32 }
 0x106   : > { %1221 = vmatmul.msk.f32.gmra.mxu1 %vm519_vm1, %v1333_v33 }
 0x107   : > { %1334 = vtanh.f32 %v428_v34 }
 0x10c   : > { %v430_v35 = vpop.f32.mrf.mxu0 }
 0x10d   : > { %v1335_v36 = vpop.eup %1334  ;;  %v431_v37 = vadd.f32 %v1617_v26, %v430_v35 }
 0x10e   : > { %1222 = vmatmul.msk.f32.gmra.mxu1 %vm519_vm1, %v1335_v36  ;;  %v466_v36 = vpop.f32.mrf.mxu3 }
 0x10f   : > { %1336 = vtanh.f32 %v431_v37  ;;  %v464_v37 = vadd.f32 %v1617_v26, %v463_v30 }
 0x113   : > { %v633_v39 = vpop.f32.mrf.mxu1 }
 0x114   : > { %v634_v40 = vadd.f32 %v1711_v38, %v633_v39  ;;  %v433_v41 = vpop.f32.mrf.mxu0 }
 0x115   : > { %v1337_v42 = vpop.eup %1336  ;;  %v434_v43 = vadd.f32 %v1617_v26, %v433_v41 }
 0x116   : > { %1338 = vtanh.f32 %v634_v40  ;;  %1223 = vmatmul.msk.f32.gmra.mxu1 %vm519_vm1, %v1337_v42 }
 0x117   : > { %1340 = vtanh.f32 %v434_v43  ;;  %v467_v43 = vadd.f32 %v1617_v26, %v466_v36 }
 0x11b   : > { %v636_v44 = vpop.f32.mrf.mxu1 }
 0x11c   : > { %v1339_v45 = vpop.eup %1338  ;;  %v637_v46 = vadd.f32 %v1711_v38, %v636_v44  ;;  %v436_v47 = vpop.f32.mrf.mxu0 }
 0x11d   : > { %v1341_v48 = vpop.eup %1340  ;;  %v437_v49 = vadd.f32 %v1617_v26, %v436_v47  ;;  %1239 = vmatmul.msk.f32.vlgmr.msra.gmra.mxu2 %vm519_vm1, %v1339_v45  ;;  %v469_v44 = vpop.f32.mrf.mxu3 }
 0x11e   : > { %1342 = vtanh.f32 %v637_v46  ;;  %1224 = vmatmul.msk.f32.gmra.mxu1 %vm519_vm1, %v1341_v48 }
 0x11f   : > { %1344 = vtanh.f32 %v437_v49  ;;  %v470_v49 = vadd.f32 %v1617_v26, %v469_v44 }
 0x123   : > { %v639_v50 = vpop.f32.mrf.mxu1 }
 0x124   : > { %v1343_v51 = vpop.eup %1342  ;;  %v640_v52 = vadd.f32 %v1711_v38, %v639_v50  ;;  %v439_v53 = vpop.f32.mrf.mxu0 }
 0x125   : > { %v1345_v54 = vpop.eup %1344  ;;  %v440_v55 = vadd.f32 %v1617_v26, %v439_v53  ;;  %1240 = vmatmul.msk.f32.gmra.mxu2 %vm519_vm1, %v1343_v51 }
 0x126   : > { %1346 = vtanh.f32 %v640_v52  ;;  %1225 = vmatmul.msk.f32.gmra.mxu1 %vm519_vm1, %v1345_v54  ;;  %v472_v54 = vpop.f32.mrf.mxu3 }
 0x127   : > { %1348 = vtanh.f32 %v440_v55  ;;  %v473_v55 = vadd.f32 %v1617_v26, %v472_v54 }
 0x12b   : > { %v642_v56 = vpop.f32.mrf.mxu1 }
 0x12c   : > { %v1347_v57 = vpop.eup %1346  ;;  %v643_v58 = vadd.f32 %v1711_v38, %v642_v56  ;;  %v442_v59 = vpop.f32.mrf.mxu0 }
 0x12d   : > { %v1349_v60 = vpop.eup %1348  ;;  %v443_v61 = vadd.f32 %v1617_v26, %v442_v59  ;;  %1241 = vmatmul.msk.f32.gmra.mxu2 %vm519_vm1, %v1347_v57 }
 0x12e   : > { %1350 = vtanh.f32 %v643_v58  ;;  %1226 = vmatmul.msk.f32.gmra.mxu1 %vm519_vm1, %v1349_v60  ;;  %v475_v60 = vpop.f32.mrf.mxu3 }
 0x12f   : > { %1352 = vtanh.f32 %v443_v61  ;;  %v476_v61 = vadd.f32 %v1617_v26, %v475_v60 }
 0x133   : > { %v645_v62 = vpop.f32.mrf.mxu1 }
 0x134   : > { %v1351_v63 = vpop.eup %1350  ;;  %v646_v0 = vadd.f32 %v1711_v38, %v645_v62  ;;  %v445_v1 = vpop.f32.mrf.mxu0 }
 0x135   : > { %v1353_v2 = vpop.eup %1352  ;;  %v446_v3 = vadd.f32 %v1617_v26, %v445_v1  ;;  %1242 = vmatmul.msk.f32.gmra.mxu2 %vm519_vm1, %v1351_v63 }
 0x136   : > { %1354 = vtanh.f32 %v646_v0  ;;  %1227 = vmatmul.msk.f32.gmra.mxu1 %vm519_vm1, %v1353_v2 }
 0x137   : > { %1356 = vtanh.f32 %v446_v3 }
 0x13b   : > { %v648_v4 = vpop.f32.mrf.mxu1 }
 0x13c   : > { %v1355_v5 = vpop.eup %1354  ;;  %v649_v6 = vadd.f32 %v1711_v38, %v648_v4  ;;  %v448_v7 = vpop.f32.mrf.mxu0 }
 0x13d   : > { %v1357_v8 = vpop.eup %1356  ;;  %v449_v9 = vadd.f32 %v1617_v26, %v448_v7  ;;  %1243 = vmatmul.msk.f32.gmra.mxu2 %vm519_vm1, %v1355_v5 }
 0x13e   : > { %1358 = vtanh.f32 %v649_v6  ;;  %1228 = vmatmul.msk.f32.gmra.mxu1 %vm519_vm1, %v1357_v8 }
 0x13f   : > { %1360 = vtanh.f32 %v449_v9 }
 0x143   : > { %v651_v11 = vpop.f32.mrf.mxu1 }
 0x144   : > { %v1359_v12 = vpop.eup %1358  ;;  %v652_v13 = vadd.f32 %v1711_v38, %v651_v11  ;;  %v451_v14 = vpop.f32.mrf.mxu0  ;;  %v1782_v11 = vld [vmem:[%s1997_s4 + $0x2] ss:$0 sm:$0xff] }
 0x145   : > { %v1361_v15 = vpop.eup %1360  ;;  %v452_v16 = vadd.f32 %v1617_v26, %v451_v14  ;;  %1244 = vmatmul.msk.f32.gmra.mxu2 %vm519_vm1, %v1359_v12 }
 0x146   : > { %1362 = vtanh.f32 %v652_v13  ;;  %1229 = vmatmul.msk.f32.gmra.mxu1 %vm519_vm1, %v1361_v15 }
 0x147   : > { %1364 = vtanh.f32 %v452_v16 }
 0x14b   : > { %v654_v17 = vpop.f32.mrf.mxu1 }
 0x14c   : > { %v1363_v18 = vpop.eup %1362  ;;  %v655_v19 = vadd.f32 %v1711_v38, %v654_v17  ;;  %v454_v20 = vpop.f32.mrf.mxu0  ;;  %v1790_v17 = vld [vmem:[%s1997_s4 + $0x3] ss:$0 sm:$0xff] }
 0x14d   : > { %v1365_v22 = vpop.eup %1364  ;;  %v455_v23 = vadd.f32 %v1617_v26, %v454_v20  ;;  %1245 = vmatmul.msk.f32.gmra.mxu2 %vm519_vm1, %v1363_v18  ;;  %v1795_v18 = vld [vmem:[%s1997_s4 + $0x4] ss:$0 sm:$0xff] }
 0x14e   : > { %1366 = vtanh.f32 %v655_v19  ;;  %1230 = vmatmul.msk.f32.gmra.mxu1 %vm519_vm1, %v1365_v22 }
 0x14f   : > { %1368 = vtanh.f32 %v455_v23 }
 0x150   : > { %1370 = vtanh.f32 %v458_v24 }
 0x153   : > { %v657_v25 = vpop.f32.mrf.mxu1 }
 0x154   : > { %v1367_v27 = vpop.eup %1366  ;;  %v658_v28 = vadd.f32 %v1711_v38, %v657_v25 }
 0x155   : > { %v1369_v29 = vpop.eup %1368  ;;  %1246 = vmatmul.msk.f32.gmra.mxu2 %vm519_vm1, %v1367_v27 }
 0x156   : > { %1372 = vtanh.f32 %v658_v28  ;;  %1231 = vmatmul.msk.f32.vlgmr.msrb.gmra.mxu3 %vm519_vm1, %v1369_v29  ;;  %v1371_v32 = vpop.eup %1370 }
 0x157   : > { %1374 = vtanh.f32 %v461_v31 }
 0x15b   : > { %v660_v33 = vpop.f32.mrf.mxu1 }
 0x15c   : > { %v1373_v34 = vpop.eup %1372  ;;  %v661_v35 = vadd.f32 %v1711_v38, %v660_v33 }
 0x15d   : > { %1247 = vmatmul.msk.f32.gmra.mxu2 %vm519_vm1, %v1373_v34  ;;  %v1375_v39 = vpop.eup %1374 }
 0x15e   : > { %1376 = vtanh.f32 %v661_v35  ;;  %1232 = vmatmul.msk.f32.gmra.mxu3 %vm519_vm1, %v1371_v32 }
 0x15f   : > { %1378 = vtanh.f32 %v464_v37 }
 0x163   : > { %v663_v40 = vpop.f32.mrf.mxu1 }
 0x164   : > { %v1377_v41 = vpop.eup %1376  ;;  %v664_v42 = vadd.f32 %v1711_v38, %v663_v40 }
 0x165   : > { %1248 = vmatmul.msk.f32.gmra.mxu2 %vm519_vm1, %v1377_v41  ;;  %v1379_v45 = vpop.eup %1378 }
 0x166   : > { %1380 = vtanh.f32 %v664_v42  ;;  %1233 = vmatmul.msk.f32.gmra.mxu3 %vm519_vm1, %v1375_v39 }
 0x167   : > { %1382 = vtanh.f32 %v467_v43 }
 0x16b   : > { %v666_v46 = vpop.f32.mrf.mxu1 }
 0x16c   : > { %v1381_v47 = vpop.eup %1380  ;;  %v667_v48 = vadd.f32 %v1711_v38, %v666_v46 }
 0x16d   : > { %1249 = vmatmul.msk.f32.gmra.mxu2 %vm519_vm1, %v1381_v47  ;;  %v1383_v50 = vpop.eup %1382 }
 0x16e   : > { %1384 = vtanh.f32 %v667_v48  ;;  %1234 = vmatmul.msk.f32.gmra.mxu3 %vm519_vm1, %v1379_v45 }
 0x16f   : > { %1386 = vtanh.f32 %v470_v49 }
 0x173   : > { %v669_v51 = vpop.f32.mrf.mxu1 }
 0x174   : > { %v1385_v52 = vpop.eup %1384  ;;  %v670_v53 = vadd.f32 %v1711_v38, %v669_v51 }
 0x175   : > { %1250 = vmatmul.msk.f32.gmra.mxu2 %vm519_vm1, %v1385_v52  ;;  %v1387_v56 = vpop.eup %1386 }
 0x176   : > { %1388 = vtanh.f32 %v670_v53  ;;  %1235 = vmatmul.msk.f32.gmra.mxu3 %vm519_vm1, %v1383_v50 }
 0x177   : > { %1390 = vtanh.f32 %v473_v55 }
 0x17b   : > { %v672_v57 = vpop.f32.mrf.mxu1 }
 0x17c   : > { %v1389_v58 = vpop.eup %1388  ;;  %v673_v59 = vadd.f32 %v1711_v38, %v672_v57 }
 0x17d   : > { %1251 = vmatmul.msk.f32.gmra.mxu2 %vm519_vm1, %v1389_v58  ;;  %v1391_v62 = vpop.eup %1390 }
 0x17e   : > { %1392 = vtanh.f32 %v673_v59  ;;  %1236 = vmatmul.msk.f32.gmra.mxu3 %vm519_vm1, %v1387_v56 }
 0x17f   : > { %1394 = vtanh.f32 %v476_v61 }
 0x183   : > { %v675_v63 = vpop.f32.mrf.mxu1 }
 0x184   : > { %v1393_v0 = vpop.eup %1392  ;;  %v676_v1 = vadd.f32 %v1711_v38, %v675_v63 }
 0x185   : > { %1252 = vmatmul.msk.f32.gmra.mxu2 %vm519_vm1, %v1393_v0  ;;  %v1395_v2 = vpop.eup %1394 }
 0x186   : > { %1396 = vtanh.f32 %v676_v1  ;;  %1237 = vmatmul.msk.f32.gmra.mxu3 %vm519_vm1, %v1391_v62 }
 0x18b   : > { %v678_v3 = vpop.f32.mrf.mxu1 }
 0x18c   : > { %v1397_v4 = vpop.eup %1396  ;;  %v679_v5 = vadd.f32 %v1711_v38, %v678_v3 }
 0x18d   : > { %1253 = vmatmul.msk.f32.gmra.mxu2 %vm519_vm1, %v1397_v4 }
 0x18e   : > { %1398 = vtanh.f32 %v679_v5  ;;  %1238 = vmatmul.msk.f32.gmra.mxu3 %vm519_vm1, %v1395_v2 }
 0x193   : > { %v681_v26 = vpop.f32.mrf.mxu1 }
 0x194   : > { %v1399_v6 = vpop.eup %1398  ;;  %v682_v7 = vadd.f32 %v1711_v38, %v681_v26 }
 0x195   : > { %1254 = vmatmul.msk.f32.gmra.mxu2 %vm519_vm1, %v1399_v6 }
 0x196   : > { %1400 = vtanh.f32 %v682_v7 }
 0x19b   : > { %v684_v8 = vpop.f32.mrf.mxu1 }
 0x19c   : > { %v1401_v9 = vpop.eup %1400  ;;  %v685_v10 = vadd.f32 %v1711_v38, %v684_v8 }
 0x19d   : > { %1255 = vmatmul.msk.f32.gmra.mxu2 %vm519_vm1, %v1401_v9 }
 0x19e   : > { %1402 = vtanh.f32 %v685_v10 }
 0x1a0   : > { %v883_v12 = vpop.f32.mrf.mxu2 }
 0x1a1   : > { %v884_v13 = vadd.f32 %v1782_v11, %v883_v12 }
 0x1a3   : > { %1404 = vtanh.f32 %v884_v13  ;;  %v687_v14 = vpop.f32.mrf.mxu1 }
 0x1a4   : > { %v1403_v15 = vpop.eup %1402  ;;  %v688_v16 = vadd.f32 %v1711_v38, %v687_v14 }
 0x1a5   : > { %1256 = vmatmul.msk.f32.gmra.mxu2 %vm519_vm1, %v1403_v15 }
 0x1a6   : > { %1406 = vtanh.f32 %v688_v16 }
 0x1a8   : > { %v886_v19 = vpop.f32.mrf.mxu2 }
 0x1a9   : > { %v1405_v20 = vpop.eup %1404  ;;  %v887_v21 = vadd.f32 %v1782_v11, %v886_v19 }
 0x1aa   : > { %v1012_v22 = vmul.f32 %v1405_v20, %v1790_v17 }
 0x1ab   : > { %1408 = vtanh.f32 %v887_v21  ;;  %v690_v23 = vpop.f32.mrf.mxu1 }
 0x1ac   : > { %v1407_v24 = vpop.eup %1406  ;;  %v1045_v25 = vadd.f32 %v1795_v18, %v1012_v22  ;;  %v691_v27 = vadd.f32 %v1711_v38, %v690_v23 }
 0x1ad   : > { %1257 = vmatmul.msk.f32.gmra.mxu2 %vm519_vm1, %v1407_v24 }
 0x1ae   : > { %1078 = vst.msk [vmem:[%s1804_s29] sm:$0xff] %vm1077_vm2, %v1045_v25  ;;  %1410 = vtanh.f32 %v691_v27 }
 0x1b0   : > { %v889_v28 = vpop.f32.mrf.mxu2 }
 0x1b1   : > { %v1409_v29 = vpop.eup %1408  ;;  %v890_v30 = vadd.f32 %v1782_v11, %v889_v28 }
 0x1b2   : > { %v1013_v31 = vmul.f32 %v1409_v29, %v1790_v17 }
 0x1b3   : > { %1412 = vtanh.f32 %v890_v30  ;;  %v693_v32 = vpop.f32.mrf.mxu1 }
 0x1b4   : > { %v1411_v33 = vpop.eup %1410  ;;  %v1046_v34 = vadd.f32 %v1795_v18, %v1013_v31  ;;  %v694_v35 = vadd.f32 %v1711_v38, %v693_v32 }
 0x1b5   : > { %1258 = vmatmul.msk.f32.gmra.mxu2 %vm519_vm1, %v1411_v33 }
 0x1b6   : > { %1079 = vst.msk [vmem:[%s1804_s29 + $0x8] sm:$0xff] %vm1077_vm2, %v1046_v34  ;;  %1414 = vtanh.f32 %v694_v35 }
 0x1b8   : > { %v892_v36 = vpop.f32.mrf.mxu2 }
 0x1b9   : > { %v1413_v37 = vpop.eup %1412  ;;  %v893_v39 = vadd.f32 %v1782_v11, %v892_v36 }
 0x1ba   : > { %v1014_v40 = vmul.f32 %v1413_v37, %v1790_v17 }
 0x1bb   : > { %1416 = vtanh.f32 %v893_v39  ;;  %v696_v41 = vpop.f32.mrf.mxu1 }
 0x1bc   : > { %v1415_v42 = vpop.eup %1414  ;;  %v1047_v43 = vadd.f32 %v1795_v18, %v1014_v40  ;;  %v697_v44 = vadd.f32 %v1711_v38, %v696_v41 }
 0x1bd   : > { %1259 = vmatmul.msk.f32.gmra.mxu2 %vm519_vm1, %v1415_v42 }
 0x1be   : > { %1080 = vst.msk [vmem:[%s1804_s29 + $0x10] sm:$0xff] %vm1077_vm2, %v1047_v43  ;;  %1418 = vtanh.f32 %v697_v44 }
 0x1c0   : > { %v895_v45 = vpop.f32.mrf.mxu2 }
 0x1c1   : > { %v1417_v46 = vpop.eup %1416  ;;  %v896_v47 = vadd.f32 %v1782_v11, %v895_v45 }
 0x1c2   : > { %v1015_v48 = vmul.f32 %v1417_v46, %v1790_v17 }
 0x1c3   : > { %1420 = vtanh.f32 %v896_v47  ;;  %v699_v49 = vpop.f32.mrf.mxu1 }
 0x1c4   : > { %v1419_v50 = vpop.eup %1418  ;;  %v1048_v51 = vadd.f32 %v1795_v18, %v1015_v48  ;;  %v700_v52 = vadd.f32 %v1711_v38, %v699_v49 }
 0x1c5   : > { %1260 = vmatmul.msk.f32.gmra.mxu2 %vm519_vm1, %v1419_v50 }
 0x1c6   : > { %1081 = vst.msk [vmem:[%s1804_s29 + $0x18] sm:$0xff] %vm1077_vm2, %v1048_v51  ;;  %1422 = vtanh.f32 %v700_v52 }
 0x1c8   : > { %v898_v53 = vpop.f32.mrf.mxu2 }
 0x1c9   : > { %v1421_v54 = vpop.eup %1420  ;;  %v899_v55 = vadd.f32 %v1782_v11, %v898_v53 }
 0x1ca   : > { %v1016_v56 = vmul.f32 %v1421_v54, %v1790_v17 }
 0x1cb   : > { %1424 = vtanh.f32 %v899_v55  ;;  %v702_v57 = vpop.f32.mrf.mxu1 }
 0x1cc   : > { %v1423_v58 = vpop.eup %1422  ;;  %v1049_v59 = vadd.f32 %v1795_v18, %v1016_v56  ;;  %v703_v60 = vadd.f32 %v1711_v38, %v702_v57 }
 0x1cd   : > { %1261 = vmatmul.msk.f32.gmra.mxu2 %vm519_vm1, %v1423_v58 }
 0x1ce   : > { %1082 = vst.msk [vmem:[%s1804_s29 + $0x20] sm:$0xff] %vm1077_vm2, %v1049_v59  ;;  %1426 = vtanh.f32 %v703_v60 }
 0x1d0   : > { %v901_v61 = vpop.f32.mrf.mxu2 }
 0x1d1   : > { %v1425_v62 = vpop.eup %1424  ;;  %v902_v63 = vadd.f32 %v1782_v11, %v901_v61 }
 0x1d2   : > { %v1017_v0 = vmul.f32 %v1425_v62, %v1790_v17 }
 0x1d3   : > { %1428 = vtanh.f32 %v902_v63 }
 0x1d4   : > { %v1427_v1 = vpop.eup %1426  ;;  %v1050_v2 = vadd.f32 %v1795_v18, %v1017_v0 }
 0x1d5   : > { %1262 = vmatmul.msk.f32.gmra.mxu2 %vm519_vm1, %v1427_v1 }
 0x1d6   : > { %1083 = vst.msk [vmem:[%s1804_s29 + $0x28] sm:$0xff] %vm1077_vm2, %v1050_v2 }
 0x1d8   : > { %v904_v3 = vpop.f32.mrf.mxu2 }
 0x1d9   : > { %v1429_v4 = vpop.eup %1428  ;;  %v905_v5 = vadd.f32 %v1782_v11, %v904_v3  ;;  %v705_v26 = vpop.f32.mrf.mxu3 }
 0x1da   : > { %v1018_v6 = vmul.f32 %v1429_v4, %v1790_v17  ;;  %v706_v7 = vadd.f32 %v1711_v38, %v705_v26 }
 0x1db   : > { %1430 = vtanh.f32 %v905_v5 }
 0x1dc   : > { %v1051_v8 = vadd.f32 %v1795_v18, %v1018_v6  ;;  %1432 = vtanh.f32 %v706_v7 }
 0x1de   : > { %1084 = vst.msk [vmem:[%s1804_s29 + $0x30] sm:$0xff] %vm1077_vm2, %v1051_v8 }
 0x1e0   : > { %v907_v9 = vpop.f32.mrf.mxu2 }
 0x1e1   : > { %v1431_v10 = vpop.eup %1430  ;;  %v908_v12 = vadd.f32 %v1782_v11, %v907_v9  ;;  %v708_v13 = vpop.f32.mrf.mxu3 }
 0x1e2   : > { %v1433_v14 = vpop.eup %1432  ;;  %v1019_v15 = vmul.f32 %v1431_v10, %v1790_v17  ;;  %v709_v16 = vadd.f32 %v1711_v38, %v708_v13 }
 0x1e3   : > { %1434 = vtanh.f32 %v908_v12  ;;  %1263 = vmatmul.msk.f32.vlgmr.msra.gmra.mxu3 %vm519_vm1, %v1433_v14 }
 0x1e4   : > { %v1052_v19 = vadd.f32 %v1795_v18, %v1019_v15  ;;  %1436 = vtanh.f32 %v709_v16 }
 0x1e6   : > { %1085 = vst.msk [vmem:[%s1804_s29 + $0x38] sm:$0xff] %vm1077_vm2, %v1052_v19 }
 0x1e8   : > { %v910_v20 = vpop.f32.mrf.mxu2 }
 0x1e9   : > { %v1435_v21 = vpop.eup %1434  ;;  %v911_v22 = vadd.f32 %v1782_v11, %v910_v20  ;;  %v711_v23 = vpop.f32.mrf.mxu3 }
 0x1ea   : > { %v1437_v24 = vpop.eup %1436  ;;  %v1020_v25 = vmul.f32 %v1435_v21, %v1790_v17  ;;  %v712_v27 = vadd.f32 %v1711_v38, %v711_v23 }
 0x1eb   : > { %1438 = vtanh.f32 %v911_v22  ;;  %1264 = vmatmul.msk.f32.gmra.mxu3 %vm519_vm1, %v1437_v24 }
 0x1ec   : > { %v1053_v28 = vadd.f32 %v1795_v18, %v1020_v25  ;;  %1440 = vtanh.f32 %v712_v27 }
 0x1ee   : > { %1086 = vst.msk [vmem:[%s1804_s29 + $0x40] sm:$0xff] %vm1077_vm2, %v1053_v28 }
 0x1f0   : > { %v913_v29 = vpop.f32.mrf.mxu2 }
 0x1f1   : > { %v1439_v30 = vpop.eup %1438  ;;  %v914_v31 = vadd.f32 %v1782_v11, %v913_v29  ;;  %v714_v32 = vpop.f32.mrf.mxu3 }
 0x1f2   : > { %v1441_v33 = vpop.eup %1440  ;;  %v1021_v34 = vmul.f32 %v1439_v30, %v1790_v17  ;;  %v715_v35 = vadd.f32 %v1711_v38, %v714_v32 }
 0x1f3   : > { %1442 = vtanh.f32 %v914_v31  ;;  %1265 = vmatmul.msk.f32.gmra.mxu3 %vm519_vm1, %v1441_v33 }
 0x1f4   : > { %v1054_v36 = vadd.f32 %v1795_v18, %v1021_v34  ;;  %1444 = vtanh.f32 %v715_v35 }
 0x1f6   : > { %1087 = vst.msk [vmem:[%s1804_s29 + $0x48] sm:$0xff] %vm1077_vm2, %v1054_v36 }
 0x1f8   : > { %v916_v37 = vpop.f32.mrf.mxu2 }
 0x1f9   : > { %v1443_v39 = vpop.eup %1442  ;;  %v917_v40 = vadd.f32 %v1782_v11, %v916_v37  ;;  %v717_v41 = vpop.f32.mrf.mxu3 }
 0x1fa   : > { %v1445_v42 = vpop.eup %1444  ;;  %v1022_v43 = vmul.f32 %v1443_v39, %v1790_v17  ;;  %v718_v44 = vadd.f32 %v1711_v38, %v717_v41 }
 0x1fb   : > { %1446 = vtanh.f32 %v917_v40  ;;  %1266 = vmatmul.msk.f32.gmra.mxu3 %vm519_vm1, %v1445_v42 }
 0x1fc   : > { %v1055_v45 = vadd.f32 %v1795_v18, %v1022_v43  ;;  %1448 = vtanh.f32 %v718_v44 }
 0x1fe   : > { %1088 = vst.msk [vmem:[%s1804_s29 + $0x50] sm:$0xff] %vm1077_vm2, %v1055_v45 }
 0x200   : > { %v919_v46 = vpop.f32.mrf.mxu2 }
 0x201   : > { %v1447_v47 = vpop.eup %1446  ;;  %v920_v48 = vadd.f32 %v1782_v11, %v919_v46  ;;  %v720_v49 = vpop.f32.mrf.mxu3 }
 0x202   : > { %v1449_v50 = vpop.eup %1448  ;;  %v1023_v51 = vmul.f32 %v1447_v47, %v1790_v17  ;;  %v721_v52 = vadd.f32 %v1711_v38, %v720_v49 }
 0x203   : > { %1450 = vtanh.f32 %v920_v48  ;;  %1267 = vmatmul.msk.f32.gmra.mxu3 %vm519_vm1, %v1449_v50 }
 0x204   : > { %v1056_v53 = vadd.f32 %v1795_v18, %v1023_v51  ;;  %1452 = vtanh.f32 %v721_v52 }
 0x206   : > { %1089 = vst.msk [vmem:[%s1804_s29 + $0x58] sm:$0xff] %vm1077_vm2, %v1056_v53 }
 0x208   : > { %v922_v54 = vpop.f32.mrf.mxu2 }
 0x209   : > { %v1451_v55 = vpop.eup %1450  ;;  %v923_v56 = vadd.f32 %v1782_v11, %v922_v54  ;;  %v723_v57 = vpop.f32.mrf.mxu3 }
 0x20a   : > { %v1453_v58 = vpop.eup %1452  ;;  %v1024_v59 = vmul.f32 %v1451_v55, %v1790_v17  ;;  %v724_v60 = vadd.f32 %v1711_v38, %v723_v57 }
 0x20b   : > { %1454 = vtanh.f32 %v923_v56  ;;  %1268 = vmatmul.msk.f32.gmra.mxu3 %vm519_vm1, %v1453_v58 }
 0x20c   : > { %v1057_v61 = vadd.f32 %v1795_v18, %v1024_v59  ;;  %1456 = vtanh.f32 %v724_v60 }
 0x20e   : > { %1090 = vst.msk [vmem:[%s1804_s29 + $0x60] sm:$0xff] %vm1077_vm2, %v1057_v61 }
 0x210   : > { %v925_v62 = vpop.f32.mrf.mxu2 }
 0x211   : > { %v1455_v63 = vpop.eup %1454  ;;  %v926_v0 = vadd.f32 %v1782_v11, %v925_v62  ;;  %v726_v1 = vpop.f32.mrf.mxu3 }
 0x212   : > { %v1457_v2 = vpop.eup %1456  ;;  %v1025_v3 = vmul.f32 %v1455_v63, %v1790_v17  ;;  %v727_v4 = vadd.f32 %v1711_v38, %v726_v1 }
 0x213   : > { %1458 = vtanh.f32 %v926_v0  ;;  %1269 = vmatmul.msk.f32.gmra.mxu3 %vm519_vm1, %v1457_v2 }
 0x214   : > { %v1058_v5 = vadd.f32 %v1795_v18, %v1025_v3  ;;  %1460 = vtanh.f32 %v727_v4 }
 0x216   : > { %1091 = vst.msk [vmem:[%s1804_s29 + $0x68] sm:$0xff] %vm1077_vm2, %v1058_v5 }
 0x218   : > { %v928_v26 = vpop.f32.mrf.mxu2 }
 0x219   : > { %v1459_v6 = vpop.eup %1458  ;;  %v929_v7 = vadd.f32 %v1782_v11, %v928_v26 }
 0x21a   : > { %v1461_v8 = vpop.eup %1460  ;;  %v1026_v9 = vmul.f32 %v1459_v6, %v1790_v17 }
 0x21b   : > { %1462 = vtanh.f32 %v929_v7  ;;  %1270 = vmatmul.msk.f32.gmra.mxu3 %vm519_vm1, %v1461_v8 }
 0x21c   : > { %v1059_v38 = vadd.f32 %v1795_v18, %v1026_v9 }
 0x21e   : > { %1092 = vst.msk [vmem:[%s1804_s29 + $0x70] sm:$0xff] %vm1077_vm2, %v1059_v38 }
 0x220   : > { %v931_v10 = vpop.f32.mrf.mxu2 }
 0x221   : > { %v1463_v12 = vpop.eup %1462  ;;  %v932_v13 = vadd.f32 %v1782_v11, %v931_v10 }
 0x222   : > { %v1027_v14 = vmul.f32 %v1463_v12, %v1790_v17 }
 0x223   : > { %1464 = vtanh.f32 %v932_v13 }
 0x224   : > { %v1060_v15 = vadd.f32 %v1795_v18, %v1027_v14 }
 0x226   : > { %1093 = vst.msk [vmem:[%s1804_s29 + $0x78] sm:$0xff] %vm1077_vm2, %v1060_v15 }
 0x228   : > { %v934_v16 = vpop.f32.mrf.mxu2 }
 0x229   : > { %v1465_v19 = vpop.eup %1464  ;;  %v935_v20 = vadd.f32 %v1782_v11, %v934_v16 }
 0x22a   : > { %v1028_v21 = vmul.f32 %v1465_v19, %v1790_v17 }
 0x22b   : > { %1466 = vtanh.f32 %v935_v20 }
 0x22c   : > { %v1061_v22 = vadd.f32 %v1795_v18, %v1028_v21 }
 0x22e   : > { %1094 = vst.msk [vmem:[%s1804_s29 + $0x80] sm:$0xff] %vm1077_vm2, %v1061_v22 }
 0x230   : > { %v937_v23 = vpop.f32.mrf.mxu2 }
 0x231   : > { %v1467_v24 = vpop.eup %1466  ;;  %v938_v25 = vadd.f32 %v1782_v11, %v937_v23 }
 0x232   : > { %v1029_v27 = vmul.f32 %v1467_v24, %v1790_v17 }
 0x233   : > { %1468 = vtanh.f32 %v938_v25 }
 0x234   : > { %v1062_v28 = vadd.f32 %v1795_v18, %v1029_v27 }
 0x236   : > { %1095 = vst.msk [vmem:[%s1804_s29 + $0x88] sm:$0xff] %vm1077_vm2, %v1062_v28 }
 0x238   : > { %v940_v29 = vpop.f32.mrf.mxu2 }
 0x239   : > { %v1469_v30 = vpop.eup %1468  ;;  %v941_v31 = vadd.f32 %v1782_v11, %v940_v29 }
 0x23a   : > { %v1030_v32 = vmul.f32 %v1469_v30, %v1790_v17 }
 0x23b   : > { %1470 = vtanh.f32 %v941_v31 }
 0x23c   : > { %v1063_v33 = vadd.f32 %v1795_v18, %v1030_v32 }
 0x23e   : > { %1096 = vst.msk [vmem:[%s1804_s29 + $0x90] sm:$0xff] %vm1077_vm2, %v1063_v33 }
 0x240   : > { %v943_v34 = vpop.f32.mrf.mxu2 }
 0x241   : > { %v1471_v35 = vpop.eup %1470  ;;  %v944_v36 = vadd.f32 %v1782_v11, %v943_v34 }
 0x242   : > { %v1031_v37 = vmul.f32 %v1471_v35, %v1790_v17 }
 0x243   : > { %1472 = vtanh.f32 %v944_v36 }
 0x244   : > { %v1064_v39 = vadd.f32 %v1795_v18, %v1031_v37 }
 0x246   : > { %1097 = vst.msk [vmem:[%s1804_s29 + $0x98] sm:$0xff] %vm1077_vm2, %v1064_v39 }
 0x248   : > { %v946_v40 = vpop.f32.mrf.mxu2 }
 0x249   : > { %v1473_v41 = vpop.eup %1472  ;;  %v947_v42 = vadd.f32 %v1782_v11, %v946_v40 }
 0x24a   : > { %v1032_v43 = vmul.f32 %v1473_v41, %v1790_v17 }
 0x24b   : > { %1474 = vtanh.f32 %v947_v42 }
 0x24c   : > { %v1065_v44 = vadd.f32 %v1795_v18, %v1032_v43 }
 0x24e   : > { %1098 = vst.msk [vmem:[%s1804_s29 + $0xa0] sm:$0xff] %vm1077_vm2, %v1065_v44 }
 0x250   : > { %v949_v45 = vpop.f32.mrf.mxu2 }
 0x251   : > { %v1475_v46 = vpop.eup %1474  ;;  %v950_v47 = vadd.f32 %v1782_v11, %v949_v45 }
 0x252   : > { %v1033_v48 = vmul.f32 %v1475_v46, %v1790_v17 }
 0x253   : > { %1476 = vtanh.f32 %v950_v47 }
 0x254   : > { %v1066_v49 = vadd.f32 %v1795_v18, %v1033_v48 }
 0x256   : > { %1099 = vst.msk [vmem:[%s1804_s29 + $0xa8] sm:$0xff] %vm1077_vm2, %v1066_v49 }
 0x258   : > { %v952_v50 = vpop.f32.mrf.mxu2 }
 0x259   : > { %v1477_v51 = vpop.eup %1476  ;;  %v953_v52 = vadd.f32 %v1782_v11, %v952_v50 }
 0x25a   : > { %v1034_v53 = vmul.f32 %v1477_v51, %v1790_v17 }
 0x25b   : > { %1478 = vtanh.f32 %v953_v52 }
 0x25c   : > { %v1067_v54 = vadd.f32 %v1795_v18, %v1034_v53 }
 0x25e   : > { %1100 = vst.msk [vmem:[%s1804_s29 + $0xb0] sm:$0xff] %vm1077_vm2, %v1067_v54 }
 0x261   : > { %v1479_v55 = vpop.eup %1478 }
 0x262   : > { %v1035_v56 = vmul.f32 %v1479_v55, %v1790_v17 }
 0x264   : > { %v1068_v57 = vadd.f32 %v1795_v18, %v1035_v56 }
 0x266   : > { %1101 = vst.msk [vmem:[%s1804_s29 + $0xb8] sm:$0xff] %vm1077_vm2, %v1068_v57  ;;  %v955_v58 = vpop.f32.mrf.mxu3 }
 0x267   : > { %v956_v59 = vadd.f32 %v1782_v11, %v955_v58 }
 0x269   : > { %1480 = vtanh.f32 %v956_v59 }
 0x26e   : > { %v958_v60 = vpop.f32.mrf.mxu3 }
 0x26f   : > { %v1481_v61 = vpop.eup %1480  ;;  %v959_v62 = vadd.f32 %v1782_v11, %v958_v60 }
 0x270   : > { %v1036_v63 = vmul.f32 %v1481_v61, %v1790_v17 }
 0x271   : > { %1482 = vtanh.f32 %v959_v62 }
 0x272   : > { %v1069_v0 = vadd.f32 %v1795_v18, %v1036_v63 }
 0x274   : > { %1102 = vst.msk [vmem:[%s1804_s29 + $0xc0] sm:$0xff] %vm1077_vm2, %v1069_v0 }
 0x276   : > { %v961_v1 = vpop.f32.mrf.mxu3 }
 0x277   : > { %v1483_v2 = vpop.eup %1482  ;;  %v962_v3 = vadd.f32 %v1782_v11, %v961_v1 }
 0x278   : > { %v1037_v4 = vmul.f32 %v1483_v2, %v1790_v17 }
 0x279   : > { %1484 = vtanh.f32 %v962_v3 }
 0x27a   : > { %v1070_v5 = vadd.f32 %v1795_v18, %v1037_v4 }
 0x27c   : > { %1103 = vst.msk [vmem:[%s1804_s29 + $0xc8] sm:$0xff] %vm1077_vm2, %v1070_v5 }
 0x27e   : > { %v964_v26 = vpop.f32.mrf.mxu3 }
 0x27f   : > { %v1485_v6 = vpop.eup %1484  ;;  %v965_v7 = vadd.f32 %v1782_v11, %v964_v26 }
 0x280   : > { %v1038_v8 = vmul.f32 %v1485_v6, %v1790_v17 }
 0x281   : > { %1486 = vtanh.f32 %v965_v7 }
 0x282   : > { %v1071_v9 = vadd.f32 %v1795_v18, %v1038_v8 }
 0x284   : > { %1104 = vst.msk [vmem:[%s1804_s29 + $0xd0] sm:$0xff] %vm1077_vm2, %v1071_v9 }
 0x286   : > { %v967_v38 = vpop.f32.mrf.mxu3 }
 0x287   : > { %v1487_v10 = vpop.eup %1486  ;;  %v968_v12 = vadd.f32 %v1782_v11, %v967_v38 }
 0x288   : > { %v1039_v13 = vmul.f32 %v1487_v10, %v1790_v17 }
 0x289   : > { %1488 = vtanh.f32 %v968_v12 }
 0x28a   : > { %v1072_v14 = vadd.f32 %v1795_v18, %v1039_v13 }
 0x28c   : > { %1105 = vst.msk [vmem:[%s1804_s29 + $0xd8] sm:$0xff] %vm1077_vm2, %v1072_v14 }
 0x28e   : > { %v970_v15 = vpop.f32.mrf.mxu3 }
 0x28f   : > { %v1489_v16 = vpop.eup %1488  ;;  %v971_v19 = vadd.f32 %v1782_v11, %v970_v15 }
 0x290   : > { %v1040_v20 = vmul.f32 %v1489_v16, %v1790_v17 }
 0x291   : > { %1490 = vtanh.f32 %v971_v19 }
 0x292   : > { %v1073_v21 = vadd.f32 %v1795_v18, %v1040_v20 }
 0x294   : > { %1106 = vst.msk [vmem:[%s1804_s29 + $0xe0] sm:$0xff] %vm1077_vm2, %v1073_v21 }
 0x296   : > { %v973_v22 = vpop.f32.mrf.mxu3 }
 0x297   : > { %v1491_v23 = vpop.eup %1490  ;;  %v974_v24 = vadd.f32 %v1782_v11, %v973_v22 }
 0x298   : > { %v1041_v25 = vmul.f32 %v1491_v23, %v1790_v17 }
 0x299   : > { %1492 = vtanh.f32 %v974_v24 }
 0x29a   : > { %v1074_v27 = vadd.f32 %v1795_v18, %v1041_v25 }
 0x29c   : > { %1107 = vst.msk [vmem:[%s1804_s29 + $0xe8] sm:$0xff] %vm1077_vm2, %v1074_v27 }
 0x29e   : > { %v976_v28 = vpop.f32.mrf.mxu3 }
 0x29f   : > { %v1493_v29 = vpop.eup %1492  ;;  %v977_v30 = vadd.f32 %v1782_v11, %v976_v28 }
 0x2a0   : > { %v1042_v31 = vmul.f32 %v1493_v29, %v1790_v17 }
 0x2a1   : > { %1494 = vtanh.f32 %v977_v30 }
 0x2a2   : > { %v1075_v32 = vadd.f32 %v1795_v18, %v1042_v31 }
 0x2a4   : > { %1108 = vst.msk [vmem:[%s1804_s29 + $0xf0] sm:$0xff] %vm1077_vm2, %v1075_v32 }
 0x2a7   : > { %v1495_v33 = vpop.eup %1494 }
 0x2a8   : > { %v1043_v34 = vmul.f32 %v1495_v33, %v1790_v17 }
 0x2aa   : > { %v1076_v35 = vadd.f32 %v1795_v18, %v1043_v34 }
 0x2ac   : > { %1109 = vst.msk [vmem:[%s1804_s29 + $0xf8] sm:$0xff] %vm1077_vm2, %v1076_v35 }
 0x2ad PF: > { %s15_s18 = sadd.s32 1, %s1502_s18  }
 0x2ae   : > { %p12_p4 = scmp.ge.s32.totalorder %s15_s18, 4  }
 0x2b0   :  { %14 = sbr.rel (!%p12_p4) target bundleno = 1 (0x1), region = 70 }

</bundles_post_ra>
